<compile_context>
chip_gen: v7x
topology: tpu7x:2x2x1
jax: 0.10.0
libtpu: 0.0.40
codegen_flags: <defaults>
</compile_context>

<pallas_src>
import jax
import jax.numpy as jnp
from jax.experimental import pallas as pl
from jax.experimental.pallas import tpu as pltpu

# Network dimensions from the PyTorch module: Linear(3,5), Linear(5,3), Linear(3,1).
D_IN, H1, H2, D_OUT = 3, 5, 3, 1

# Offsets into the packed 42-float parameter buffer (row-major flattening).
OFF_W1 = 0                      # w1[k, j] at OFF_W1 + k * H1 + j   (3x5)
OFF_B1 = OFF_W1 + D_IN * H1     # b1[j]    at OFF_B1 + j            (5)
OFF_W2 = OFF_B1 + H1            # w2[k, j] at OFF_W2 + k * H2 + j   (5x3)
OFF_B2 = OFF_W2 + H1 * H2       # b2[j]    at OFF_B2 + j            (3)
OFF_W3 = OFF_B2 + H2            # w3[k]    at OFF_W3 + k            (3x1)
OFF_B3 = OFF_W3 + H2 * D_OUT    # b3       at OFF_B3                (1)
N_PARAMS = OFF_B3 + D_OUT       # 42


def _round_up(n, m):
    return ((n + m - 1) // m) * m


def mlp_kernel(params_ref, xt_ref, o_ref):
    """Fused MLP on one lane-dense batch tile.

    params_ref : SMEM (42,)  f32  -- all weights/biases, resident scalars
    xt_ref     : VMEM (3, TB) f32 -- x transposed: batch on the 128-lane axis
    o_ref      : VMEM (1, TB) f32 -- lane-dense output tile
    """
    # Input rows (each (1, TB)) -- full-occupancy vregs.
    x = [xt_ref[k:k + 1, :] for k in range(D_IN)]

    # fc1: 3 -> 5, unrolled VPU scalar*vector FMAs, ReLU.
    h1 = []
    for j in range(H1):
        v = x[0] * params_ref[OFF_W1 + 0 * H1 + j]
        for k in range(1, D_IN):
            v = v + x[k] * params_ref[OFF_W1 + k * H1 + j]
        v = v + params_ref[OFF_B1 + j]
        h1.append(jnp.maximum(v, 0.0))

    # fc2: 5 -> 3, ReLU.
    h2 = []
    for j in range(H2):
        v = h1[0] * params_ref[OFF_W2 + 0 * H2 + j]
        for k in range(1, H1):
            v = v + h1[k] * params_ref[OFF_W2 + k * H2 + j]
        v = v + params_ref[OFF_B2 + j]
        h2.append(jnp.maximum(v, 0.0))

    # fc3: 3 -> 1, sigmoid (exp + approx reciprocal both run on the EUP slot).
    v = h2[0] * params_ref[OFF_W3 + 0]
    for k in range(1, H2):
        v = v + h2[k] * params_ref[OFF_W3 + k]
    v = v + params_ref[OFF_B3]
    o_ref[...] = pl.reciprocal(1.0 + jnp.exp(-v), approx=True)


def net_forward(x, packed_params, *, tb=2048):
    """x: [B, 3] float32 -> [B, 1] float32.

    Wrapper handles the lane-dense layout plumbing: pad B up to a multiple of
    the batch tile, transpose to [3, Bp], run a pipelined 1-D batch grid, and
    transpose/slice the [1, Bp] result back to [B, 1].
    """
    B = x.shape[0]
    # Batch tile: multiple of 128 lanes; large to amortize per-step overhead,
    # but don't over-pad tiny batches.  (3+1) rows * 4 B * tb * 2 buffers stays
    # far below even v7x's scoped-VMEM default at tb=2048.
    tb = min(tb, _round_up(B, 128))
    Bp = _round_up(B, tb)
    if Bp != B:
        x = jnp.pad(x, ((0, Bp - B), (0, 0)))
    xt = x.T  # [3, Bp] -- batch on the 128-lane axis (done wrapper-side)

    grid = (Bp // tb,)
    out_t = pl.pallas_call(
        mlp_kernel,
        out_shape=jax.ShapeDtypeStruct((D_OUT, Bp), jnp.float32),
        grid=grid,
        in_specs=[
            # Packed params: one tiny resident SMEM buffer (no per-tile DMA).
            pl.BlockSpec(memory_space=pltpu.MemorySpace.SMEM),
            # x^T batch tile, pipelined/double-buffered along the grid.
            pl.BlockSpec((D_IN, tb), lambda i: (0, i)),
        ],
        out_specs=pl.BlockSpec((D_OUT, tb), lambda i: (0, i)),
        compiler_params=pltpu.CompilerParams(
            dimension_semantics=("parallel",)),  # megacore sharding on v7x
    )(packed_params, xt)

    return out_t.T[:B]  # back to [B, 1]


def init_params(key):
    """Deterministic init matching nn.Linear shapes.

    PyTorch stores Linear weights as [out, in]; we keep them transposed
    ([in, out]) so w[k, j] multiplies input feature k into output feature j.
    """
    k1, k2, k3, k4, k5, k6 = jax.random.split(key, 6)

    def uniform_init(k, shape, fan_in):
        bound = 1.0 / jnp.sqrt(jnp.float32(fan_in))
        return jax.random.uniform(k, shape, jnp.float32, -bound, bound)

    w1 = uniform_init(k1, (D_IN, H1), D_IN)    # fc1: Linear(3, 5)
    b1 = uniform_init(k2, (1, H1), D_IN)
    w2 = uniform_init(k3, (H1, H2), H1)        # fc2: Linear(5, 3)
    b2 = uniform_init(k4, (1, H2), H1)
    w3 = uniform_init(k5, (H2, D_OUT), H2)     # fc3: Linear(3, 1)
    b3 = uniform_init(k6, (1, D_OUT), H2)
    return (w1, b1, w2, b2, w3, b3)


def pack_params(params):
    """Flatten all weights/biases into one (42,) f32 buffer (kernel layout)."""
    w1, b1, w2, b2, w3, b3 = params
    packed = jnp.concatenate([
        w1.reshape(-1), b1.reshape(-1),
        w2.reshape(-1), b2.reshape(-1),
        w3.reshape(-1), b3.reshape(-1),
    ]).astype(jnp.float32)
    assert packed.shape == (N_PARAMS,), packed.shape
    return packed


def reference_forward(x, params):
    w1, b1, w2, b2, w3, b3 = params
    h = jax.nn.relu(x @ w1 + b1)
    h = jax.nn.relu(h @ w2 + b2)
    return jax.nn.sigmoid(h @ w3 + b3)


if __name__ == "__main__":
    key = jax.random.PRNGKey(0)
    pkey, xkey = jax.random.split(key)

    params = init_params(pkey)
    packed = pack_params(params)
    x = jax.random.normal(xkey, (8, 3), jnp.float32)  # batch=8, columns_in=3

    out = net_forward(x, packed)
    out = jax.block_until_ready(out)

    ref = reference_forward(x, params)
    assert out.shape == (8, 1), out.shape
    # Tolerance covers the approximate EUP reciprocal used for the sigmoid.
    assert jnp.allclose(out, ref, atol=2e-3, rtol=2e-3), (out, ref)

    print("KERNEL_OK")
</pallas_src>

<mosaic_0001>
module attributes {stable_mosaic.version = 11 : i64} {
  func.func @mlp_kernel(%arg0: i32, %arg1: memref<42xf32, #tpu.memory_space<smem>>, %arg2: memref<3x128xf32, #tpu.memory_space<vmem>>, %arg3: memref<1x128xf32, #tpu.memory_space<vmem>>) attributes {dimension_semantics = [#tpu.dimension_semantics<parallel>], iteration_bounds = array<i64: 1>, scalar_prefetch = 0 : i64, scratch_operands = 0 : i64, tpu.core_type = #tpu.core_type<tc>, window_params = [{transform_indices = @transform_0, window_bounds = array<i64: 42>}, {transform_indices = @transform_1, window_bounds = array<i64: 3, 128>}, {transform_indices = @transform_2, window_bounds = array<i64: 1, 128>}]} {
    %c0 = arith.constant 0 : index
    %c0_0 = arith.constant 0 : index
    %0 = vector.load %arg2[%c0, %c0_0] : memref<3x128xf32, #tpu.memory_space<vmem>>, vector<1x128xf32>
    %c1 = arith.constant 1 : index
    %c0_1 = arith.constant 0 : index
    %1 = vector.load %arg2[%c1, %c0_1] : memref<3x128xf32, #tpu.memory_space<vmem>>, vector<1x128xf32>
    %c2 = arith.constant 2 : index
    %c0_2 = arith.constant 0 : index
    %2 = vector.load %arg2[%c2, %c0_2] : memref<3x128xf32, #tpu.memory_space<vmem>>, vector<1x128xf32>
    %c0_3 = arith.constant 0 : index
    %3 = memref.load %arg1[%c0_3] : memref<42xf32, #tpu.memory_space<smem>>
    %4 = vector.broadcast %3 : f32 to vector<1x128xf32>
    %5 = arith.mulf %0, %4 : vector<1x128xf32>
    %c5 = arith.constant 5 : index
    %6 = memref.load %arg1[%c5] : memref<42xf32, #tpu.memory_space<smem>>
    %7 = vector.broadcast %6 : f32 to vector<1x128xf32>
    %8 = arith.mulf %1, %7 : vector<1x128xf32>
    %9 = arith.addf %5, %8 : vector<1x128xf32>
    %c10 = arith.constant 10 : index
    %10 = memref.load %arg1[%c10] : memref<42xf32, #tpu.memory_space<smem>>
    %11 = vector.broadcast %10 : f32 to vector<1x128xf32>
    %12 = arith.mulf %2, %11 : vector<1x128xf32>
    %13 = arith.addf %9, %12 : vector<1x128xf32>
    %c15 = arith.constant 15 : index
    %14 = memref.load %arg1[%c15] : memref<42xf32, #tpu.memory_space<smem>>
    %15 = vector.broadcast %14 : f32 to vector<1x128xf32>
    %16 = arith.addf %13, %15 : vector<1x128xf32>
    %cst = arith.constant 0.000000e+00 : f32
    %17 = vector.broadcast %cst : f32 to vector<1x128xf32>
    %18 = arith.maximumf %16, %17 : vector<1x128xf32>
    %c1_4 = arith.constant 1 : index
    %19 = memref.load %arg1[%c1_4] : memref<42xf32, #tpu.memory_space<smem>>
    %20 = vector.broadcast %19 : f32 to vector<1x128xf32>
    %21 = arith.mulf %0, %20 : vector<1x128xf32>
    %c6 = arith.constant 6 : index
    %22 = memref.load %arg1[%c6] : memref<42xf32, #tpu.memory_space<smem>>
    %23 = vector.broadcast %22 : f32 to vector<1x128xf32>
    %24 = arith.mulf %1, %23 : vector<1x128xf32>
    %25 = arith.addf %21, %24 : vector<1x128xf32>
    %c11 = arith.constant 11 : index
    %26 = memref.load %arg1[%c11] : memref<42xf32, #tpu.memory_space<smem>>
    %27 = vector.broadcast %26 : f32 to vector<1x128xf32>
    %28 = arith.mulf %2, %27 : vector<1x128xf32>
    %29 = arith.addf %25, %28 : vector<1x128xf32>
    %c16 = arith.constant 16 : index
    %30 = memref.load %arg1[%c16] : memref<42xf32, #tpu.memory_space<smem>>
    %31 = vector.broadcast %30 : f32 to vector<1x128xf32>
    %32 = arith.addf %29, %31 : vector<1x128xf32>
    %cst_5 = arith.constant 0.000000e+00 : f32
    %33 = vector.broadcast %cst_5 : f32 to vector<1x128xf32>
    %34 = arith.maximumf %32, %33 : vector<1x128xf32>
    %c2_6 = arith.constant 2 : index
    %35 = memref.load %arg1[%c2_6] : memref<42xf32, #tpu.memory_space<smem>>
    %36 = vector.broadcast %35 : f32 to vector<1x128xf32>
    %37 = arith.mulf %0, %36 : vector<1x128xf32>
    %c7 = arith.constant 7 : index
    %38 = memref.load %arg1[%c7] : memref<42xf32, #tpu.memory_space<smem>>
    %39 = vector.broadcast %38 : f32 to vector<1x128xf32>
    %40 = arith.mulf %1, %39 : vector<1x128xf32>
    %41 = arith.addf %37, %40 : vector<1x128xf32>
    %c12 = arith.constant 12 : index
    %42 = memref.load %arg1[%c12] : memref<42xf32, #tpu.memory_space<smem>>
    %43 = vector.broadcast %42 : f32 to vector<1x128xf32>
    %44 = arith.mulf %2, %43 : vector<1x128xf32>
    %45 = arith.addf %41, %44 : vector<1x128xf32>
    %c17 = arith.constant 17 : index
    %46 = memref.load %arg1[%c17] : memref<42xf32, #tpu.memory_space<smem>>
    %47 = vector.broadcast %46 : f32 to vector<1x128xf32>
    %48 = arith.addf %45, %47 : vector<1x128xf32>
    %cst_7 = arith.constant 0.000000e+00 : f32
    %49 = vector.broadcast %cst_7 : f32 to vector<1x128xf32>
    %50 = arith.maximumf %48, %49 : vector<1x128xf32>
    %c3 = arith.constant 3 : index
    %51 = memref.load %arg1[%c3] : memref<42xf32, #tpu.memory_space<smem>>
    %52 = vector.broadcast %51 : f32 to vector<1x128xf32>
    %53 = arith.mulf %0, %52 : vector<1x128xf32>
    %c8 = arith.constant 8 : index
    %54 = memref.load %arg1[%c8] : memref<42xf32, #tpu.memory_space<smem>>
    %55 = vector.broadcast %54 : f32 to vector<1x128xf32>
    %56 = arith.mulf %1, %55 : vector<1x128xf32>
    %57 = arith.addf %53, %56 : vector<1x128xf32>
    %c13 = arith.constant 13 : index
    %58 = memref.load %arg1[%c13] : memref<42xf32, #tpu.memory_space<smem>>
    %59 = vector.broadcast %58 : f32 to vector<1x128xf32>
    %60 = arith.mulf %2, %59 : vector<1x128xf32>
    %61 = arith.addf %57, %60 : vector<1x128xf32>
    %c18 = arith.constant 18 : index
    %62 = memref.load %arg1[%c18] : memref<42xf32, #tpu.memory_space<smem>>
    %63 = vector.broadcast %62 : f32 to vector<1x128xf32>
    %64 = arith.addf %61, %63 : vector<1x128xf32>
    %cst_8 = arith.constant 0.000000e+00 : f32
    %65 = vector.broadcast %cst_8 : f32 to vector<1x128xf32>
    %66 = arith.maximumf %64, %65 : vector<1x128xf32>
    %c4 = arith.constant 4 : index
    %67 = memref.load %arg1[%c4] : memref<42xf32, #tpu.memory_space<smem>>
    %68 = vector.broadcast %67 : f32 to vector<1x128xf32>
    %69 = arith.mulf %0, %68 : vector<1x128xf32>
    %c9 = arith.constant 9 : index
    %70 = memref.load %arg1[%c9] : memref<42xf32, #tpu.memory_space<smem>>
    %71 = vector.broadcast %70 : f32 to vector<1x128xf32>
    %72 = arith.mulf %1, %71 : vector<1x128xf32>
    %73 = arith.addf %69, %72 : vector<1x128xf32>
    %c14 = arith.constant 14 : index
    %74 = memref.load %arg1[%c14] : memref<42xf32, #tpu.memory_space<smem>>
    %75 = vector.broadcast %74 : f32 to vector<1x128xf32>
    %76 = arith.mulf %2, %75 : vector<1x128xf32>
    %77 = arith.addf %73, %76 : vector<1x128xf32>
    %c19 = arith.constant 19 : index
    %78 = memref.load %arg1[%c19] : memref<42xf32, #tpu.memory_space<smem>>
    %79 = vector.broadcast %78 : f32 to vector<1x128xf32>
    %80 = arith.addf %77, %79 : vector<1x128xf32>
    %cst_9 = arith.constant 0.000000e+00 : f32
    %81 = vector.broadcast %cst_9 : f32 to vector<1x128xf32>
    %82 = arith.maximumf %80, %81 : vector<1x128xf32>
    %c20 = arith.constant 20 : index
    %83 = memref.load %arg1[%c20] : memref<42xf32, #tpu.memory_space<smem>>
    %84 = vector.broadcast %83 : f32 to vector<1x128xf32>
    %85 = arith.mulf %18, %84 : vector<1x128xf32>
    %c23 = arith.constant 23 : index
    %86 = memref.load %arg1[%c23] : memref<42xf32, #tpu.memory_space<smem>>
    %87 = vector.broadcast %86 : f32 to vector<1x128xf32>
    %88 = arith.mulf %34, %87 : vector<1x128xf32>
    %89 = arith.addf %85, %88 : vector<1x128xf32>
    %c26 = arith.constant 26 : index
    %90 = memref.load %arg1[%c26] : memref<42xf32, #tpu.memory_space<smem>>
    %91 = vector.broadcast %90 : f32 to vector<1x128xf32>
    %92 = arith.mulf %50, %91 : vector<1x128xf32>
    %93 = arith.addf %89, %92 : vector<1x128xf32>
    %c29 = arith.constant 29 : index
    %94 = memref.load %arg1[%c29] : memref<42xf32, #tpu.memory_space<smem>>
    %95 = vector.broadcast %94 : f32 to vector<1x128xf32>
    %96 = arith.mulf %66, %95 : vector<1x128xf32>
    %97 = arith.addf %93, %96 : vector<1x128xf32>
    %c32 = arith.constant 32 : index
    %98 = memref.load %arg1[%c32] : memref<42xf32, #tpu.memory_space<smem>>
    %99 = vector.broadcast %98 : f32 to vector<1x128xf32>
    %100 = arith.mulf %82, %99 : vector<1x128xf32>
    %101 = arith.addf %97, %100 : vector<1x128xf32>
    %c35 = arith.constant 35 : index
    %102 = memref.load %arg1[%c35] : memref<42xf32, #tpu.memory_space<smem>>
    %103 = vector.broadcast %102 : f32 to vector<1x128xf32>
    %104 = arith.addf %101, %103 : vector<1x128xf32>
    %cst_10 = arith.constant 0.000000e+00 : f32
    %105 = vector.broadcast %cst_10 : f32 to vector<1x128xf32>
    %106 = arith.maximumf %104, %105 : vector<1x128xf32>
    %c21 = arith.constant 21 : index
    %107 = memref.load %arg1[%c21] : memref<42xf32, #tpu.memory_space<smem>>
    %108 = vector.broadcast %107 : f32 to vector<1x128xf32>
    %109 = arith.mulf %18, %108 : vector<1x128xf32>
    %c24 = arith.constant 24 : index
    %110 = memref.load %arg1[%c24] : memref<42xf32, #tpu.memory_space<smem>>
    %111 = vector.broadcast %110 : f32 to vector<1x128xf32>
    %112 = arith.mulf %34, %111 : vector<1x128xf32>
    %113 = arith.addf %109, %112 : vector<1x128xf32>
    %c27 = arith.constant 27 : index
    %114 = memref.load %arg1[%c27] : memref<42xf32, #tpu.memory_space<smem>>
    %115 = vector.broadcast %114 : f32 to vector<1x128xf32>
    %116 = arith.mulf %50, %115 : vector<1x128xf32>
    %117 = arith.addf %113, %116 : vector<1x128xf32>
    %c30 = arith.constant 30 : index
    %118 = memref.load %arg1[%c30] : memref<42xf32, #tpu.memory_space<smem>>
    %119 = vector.broadcast %118 : f32 to vector<1x128xf32>
    %120 = arith.mulf %66, %119 : vector<1x128xf32>
    %121 = arith.addf %117, %120 : vector<1x128xf32>
    %c33 = arith.constant 33 : index
    %122 = memref.load %arg1[%c33] : memref<42xf32, #tpu.memory_space<smem>>
    %123 = vector.broadcast %122 : f32 to vector<1x128xf32>
    %124 = arith.mulf %82, %123 : vector<1x128xf32>
    %125 = arith.addf %121, %124 : vector<1x128xf32>
    %c36 = arith.constant 36 : index
    %126 = memref.load %arg1[%c36] : memref<42xf32, #tpu.memory_space<smem>>
    %127 = vector.broadcast %126 : f32 to vector<1x128xf32>
    %128 = arith.addf %125, %127 : vector<1x128xf32>
    %cst_11 = arith.constant 0.000000e+00 : f32
    %129 = vector.broadcast %cst_11 : f32 to vector<1x128xf32>
    %130 = arith.maximumf %128, %129 : vector<1x128xf32>
    %c22 = arith.constant 22 : index
    %131 = memref.load %arg1[%c22] : memref<42xf32, #tpu.memory_space<smem>>
    %132 = vector.broadcast %131 : f32 to vector<1x128xf32>
    %133 = arith.mulf %18, %132 : vector<1x128xf32>
    %c25 = arith.constant 25 : index
    %134 = memref.load %arg1[%c25] : memref<42xf32, #tpu.memory_space<smem>>
    %135 = vector.broadcast %134 : f32 to vector<1x128xf32>
    %136 = arith.mulf %34, %135 : vector<1x128xf32>
    %137 = arith.addf %133, %136 : vector<1x128xf32>
    %c28 = arith.constant 28 : index
    %138 = memref.load %arg1[%c28] : memref<42xf32, #tpu.memory_space<smem>>
    %139 = vector.broadcast %138 : f32 to vector<1x128xf32>
    %140 = arith.mulf %50, %139 : vector<1x128xf32>
    %141 = arith.addf %137, %140 : vector<1x128xf32>
    %c31 = arith.constant 31 : index
    %142 = memref.load %arg1[%c31] : memref<42xf32, #tpu.memory_space<smem>>
    %143 = vector.broadcast %142 : f32 to vector<1x128xf32>
    %144 = arith.mulf %66, %143 : vector<1x128xf32>
    %145 = arith.addf %141, %144 : vector<1x128xf32>
    %c34 = arith.constant 34 : index
    %146 = memref.load %arg1[%c34] : memref<42xf32, #tpu.memory_space<smem>>
    %147 = vector.broadcast %146 : f32 to vector<1x128xf32>
    %148 = arith.mulf %82, %147 : vector<1x128xf32>
    %149 = arith.addf %145, %148 : vector<1x128xf32>
    %c37 = arith.constant 37 : index
    %150 = memref.load %arg1[%c37] : memref<42xf32, #tpu.memory_space<smem>>
    %151 = vector.broadcast %150 : f32 to vector<1x128xf32>
    %152 = arith.addf %149, %151 : vector<1x128xf32>
    %cst_12 = arith.constant 0.000000e+00 : f32
    %153 = vector.broadcast %cst_12 : f32 to vector<1x128xf32>
    %154 = arith.maximumf %152, %153 : vector<1x128xf32>
    %c38 = arith.constant 38 : index
    %155 = memref.load %arg1[%c38] : memref<42xf32, #tpu.memory_space<smem>>
    %156 = vector.broadcast %155 : f32 to vector<1x128xf32>
    %157 = arith.mulf %106, %156 : vector<1x128xf32>
    %c39 = arith.constant 39 : index
    %158 = memref.load %arg1[%c39] : memref<42xf32, #tpu.memory_space<smem>>
    %159 = vector.broadcast %158 : f32 to vector<1x128xf32>
    %160 = arith.mulf %130, %159 : vector<1x128xf32>
    %161 = arith.addf %157, %160 : vector<1x128xf32>
    %c40 = arith.constant 40 : index
    %162 = memref.load %arg1[%c40] : memref<42xf32, #tpu.memory_space<smem>>
    %163 = vector.broadcast %162 : f32 to vector<1x128xf32>
    %164 = arith.mulf %154, %163 : vector<1x128xf32>
    %165 = arith.addf %161, %164 : vector<1x128xf32>
    %c41 = arith.constant 41 : index
    %166 = memref.load %arg1[%c41] : memref<42xf32, #tpu.memory_space<smem>>
    %167 = vector.broadcast %166 : f32 to vector<1x128xf32>
    %168 = arith.addf %165, %167 : vector<1x128xf32>
    %cst_13 = arith.constant 0.000000e+00 : f32
    %169 = vector.broadcast %cst_13 : f32 to vector<1x128xf32>
    %170 = arith.subf %169, %168 : vector<1x128xf32>
    %171 = math.exp %170 : vector<1x128xf32>
    %cst_14 = arith.constant 1.000000e+00 : f32
    %172 = vector.broadcast %cst_14 : f32 to vector<1x128xf32>
    %173 = arith.addf %172, %171 : vector<1x128xf32>
    %174 = tpu.reciprocal %173 {approx = true} : vector<1x128xf32> -> vector<1x128xf32>
    %c0_15 = arith.constant 0 : index
    %c0_16 = arith.constant 0 : index
    %175 = vector.load %arg3[%c0_15, %c0_16] : memref<1x128xf32, #tpu.memory_space<vmem>>, vector<1x128xf32>
    tpu.vector_store %arg3[%c0_15, %c0_16], %174 {strides = array<i32>} : memref<1x128xf32, #tpu.memory_space<vmem>>, vector<1x128xf32>,
    return
  }
  func.func @transform_0(%arg0: i32) -> i32 {
    %c0_i32 = arith.constant 0 : i32
    %c0_i32_0 = arith.constant 0 : i32
    return %c0_i32 : i32
  }
  func.func @transform_1(%arg0: i32) -> (i32, i32) {
    %c0_i32 = arith.constant 0 : i32
    %c0_i32_0 = arith.constant 0 : i32
    return %c0_i32, %arg0 : i32, i32
  }
  func.func @transform_2(%arg0: i32) -> (i32, i32) {
    %c0_i32 = arith.constant 0 : i32
    %c0_i32_0 = arith.constant 0 : i32
    return %c0_i32, %arg0 : i32, i32
  }
}

</mosaic_0001>

<bundles_post_ra>
// kernel: tpu_custom_call.1
= control target key start
LH: loop header
LB: loop body
LE: loop exit
PB: predicated region body
PF: predicated region fallthrough
CT: control target
= control target key end

     0   :  { %7 = vsyncpa [#allocation5], 0  ;;  %s500_s0 = inlined_call_operand.hbm [shape: f32[42], index: 0, kind: input, shape index: {}]   ;;  %s501_s1 = inlined_call_operand.hbm [shape: f32[3,128], index: 1, kind: input, shape index: {}]   ;;  %s502_s2 = inlined_call_operand.hbm [shape: f32[1,128], index: 2, kind: output, shape index: {}]  }
   0x1   :  { %8 = vsyncpa [#allocation3], 0 }
   0x2   :  { %9 = vsyncpa [#allocation4], 0  ;;  %s266_s11 = scalar_lea.hbm %s500_s0, 16 }
   0x3   :  { %p267_p0 = scmp.ne.s32.totalorder %s500_s0, %s266_s11  ;;  %p270_p1 = scmp.lt.u32.totalorder %s266_s11, %s500_s0 }
   0x5   :  { %p272_p2 = pnand %p270_p1, %p267_p0 }
   0x7   :  { %275 = shalt.err (!%p272_p2)
}
   0x8   :  { %s326_s16 = smov [#allocation2]   ;;  %s327_s19 = smov [#allocation6]  }
   0x9   :  { %17 = dma.hbm_to_smem %s500_s0, 16, %s326_s16, [#allocation5]  }
   0xa   :  { %s24_s20 = sshll.u32 %s327_s19, 4  ;;  %s276_s23 = scalar_lea.hbm %s501_s1, 64  ;;  %s25_s20 = int_to_ptr.vmem [resolvable:$true] %s24_s20 }
   0xb   :  { %p277_p3 = scmp.ne.s32.totalorder %s501_s1, %s276_s23  ;;  %p280_p4 = scmp.lt.u32.totalorder %s276_s23, %s501_s1 }
   0xd   :  { %p282_p5 = pnand %p280_p4, %p277_p3 }
   0xf   :  { %285 = shalt.err (!%p282_p5)
}
  0x10   :  { %s286_s28 = scalar_lea.vmem %s25_s20, 64  ;;  %p291_p7 = scmp.lt.s32.totalorder %s25_s20, %s25_s20 }
  0x11   :  { %p287_p6 = scmp.ne.s32.totalorder %s25_s20, %s286_s28  ;;  %p292_p8 = scmp.lt.s32.totalorder %s286_s28, %s286_s28 }
  0x13   :  { %p293_p9 = por %p292_p8, %p291_p7 }
  0x15   :  { %p294_p10 = pnand %p293_p9, %p287_p6 }
  0x17   :  { %297 = shalt.err (!%p294_p10)
}
  0x18   :  { %27 = dma.hbm_to_vmem [thread:$0]  %s501_s1, 64, %s25_s20, [#allocation3]  }
  0x19   :  { %320 = dma.done.wait [#allocation5], 16  }
  0x1a   :  { %321 = vsyncadd [#allocation5], 4294967280 }
  0x1b   :  { %322 = dma.done.wait [#allocation3], 64  }
  0x1c   :  { %323 = vsyncadd [#allocation3], 4294967232 }
  0x1d   :  { %34 = sfence }
  0x1e   :  { %s38_s30 = sld [smem:[#allocation2]]  ;;  %s218_s3 = sld [smem:[#allocation2 + $0x5]]  ;;  %v370_v0 = vld [vmem:[#allocation6] sm:$0x1]  ;;  %v374_v1 = vld [vmem:[#allocation6 + $0x1] sm:$0x1] }
  0x1f   :  { %s219_s4 = sld [smem:[#allocation2 + $0xa]]  ;;  %s368_s5 = sld [smem:[#allocation2 + $0xf]]  ;;  %v380_v2 = vld [vmem:[#allocation6 + $0x2] sm:$0x1] }
  0x20   :  { %s221_s6 = sld [smem:[#allocation2 + $0x1]]  ;;  %s222_s7 = sld [smem:[#allocation2 + $0x6]] }
  0x21   :  { %s223_s8 = sld [smem:[#allocation2 + $0xb]]  ;;  %s372_s9 = sld [smem:[#allocation2 + $0x10]] }
  0x22   :  { %s376_s1 = sld [smem:[#allocation2 + $0x2]]  ;;  %s378_s10 = sld [smem:[#allocation2 + $0x7]] }
  0x23   :  { %s382_s11 = sld [smem:[#allocation2 + $0xc]]  ;;  %s384_s12 = sld [smem:[#allocation2 + $0x11]] }
  0x24   :  { %v39_v3 = vstv %s38_s30  ;;  %v42_v4 = vstv %s218_s3  ;;  %s386_s13 = sld [smem:[#allocation2 + $0x3]]  ;;  %s388_s14 = sld [smem:[#allocation2 + $0x8]] }
  0x25   :  { %v40_v5 = vmul.f32 %v39_v3, %v370_v0  ;;  %v43_v6 = vmul.f32 %v42_v4, %v374_v1  ;;  %v46_v7 = vstv %s219_s4  ;;  %s392_s15 = sld [smem:[#allocation2 + $0xd]]  ;;  %s394_s16 = sld [smem:[#allocation2 + $0x12]]  ;;  %v50_v9 = vstv %s368_s5 }
  0x26   :  { %v47_v8 = vmul.f32 %v46_v7, %v380_v2  ;;  %v54_v10 = vstv %s221_s6  ;;  %v57_v11 = vstv %s222_s7  ;;  %s398_s17 = sld [smem:[#allocation2 + $0x4]]  ;;  %s400_s18 = sld [smem:[#allocation2 + $0x9]] }
  0x27   :  { %v44_v12 = vadd.f32 %v43_v6, %v40_v5  ;;  %v55_v13 = vmul.f32 %v54_v10, %v370_v0  ;;  %v58_v14 = vmul.f32 %v57_v11, %v374_v1  ;;  %v61_v15 = vstv %s223_s8  ;;  %s404_s19 = sld [smem:[#allocation2 + $0xe]]  ;;  %s410_s20 = sld [smem:[#allocation2 + $0x14]] }
  0x28   :  { %v62_v16 = vmul.f32 %v61_v15, %v380_v2  ;;  %v65_v17 = vstv %s372_s9  ;;  %v69_v18 = vstv %s376_s1  ;;  %v72_v19 = vstv %s378_s10  ;;  %s414_s21 = sld [smem:[#allocation2 + $0x17]]  ;;  %s420_s22 = sld [smem:[#allocation2 + $0x13]] }
  0x29   :  { %v48_v20 = vadd.f32 %v47_v8, %v44_v12  ;;  %v59_v21 = vadd.f32 %v58_v14, %v55_v13  ;;  %v70_v22 = vmul.f32 %v69_v18, %v370_v0  ;;  %v73_v23 = vmul.f32 %v72_v19, %v374_v1  ;;  %s422_s23 = sld [smem:[#allocation2 + $0x1a]]  ;;  %s425_s24 = sld [smem:[#allocation2 + $0x1d]] }
  0x2a   :  { %v76_v24 = vstv %s382_s11  ;;  %v80_v25 = vstv %s384_s12  ;;  %v84_v26 = vstv %s386_s13  ;;  %v87_v27 = vstv %s388_s14  ;;  %s427_s25 = sld [smem:[#allocation2 + $0x20]]  ;;  %s433_s26 = sld [smem:[#allocation2 + $0x15]] }
  0x2b   :  { %v51_v28 = vadd.f32 %v50_v9, %v48_v20  ;;  %v63_v29 = vadd.f32 %v62_v16, %v59_v21  ;;  %v74_v30 = vadd.f32 %v73_v23, %v70_v22  ;;  %v77_v31 = vmul.f32 %v76_v24, %v380_v2  ;;  %s435_s27 = sld [smem:[#allocation2 + $0x18]]  ;;  %s438_s28 = sld [smem:[#allocation2 + $0x1b]] }
  0x2c   :  { %v85_v32 = vmul.f32 %v84_v26, %v370_v0  ;;  %v88_v33 = vmul.f32 %v87_v27, %v374_v1  ;;  %v91_v34 = vstv %s392_s15  ;;  %v95_v35 = vstv %s394_s16  ;;  %s443_s0 = sld [smem:[#allocation2 + $0x1e]]  ;;  %s447_s29 = sld [smem:[#allocation2 + $0x21]] }
  0x2d   :  { %v52_v36 = vmax.f32 %v51_v28, 0.0  ;;  %v66_v37 = vadd.f32 %v65_v17, %v63_v29  ;;  %v78_v38 = vadd.f32 %v77_v31, %v74_v30  ;;  %v92_v39 = vmul.f32 %v91_v34, %v380_v2  ;;  %s451_s30 = sld [smem:[#allocation2 + $0x16]]  ;;  %s453_s3 = sld [smem:[#allocation2 + $0x19]] }
  0x2e   :  { %v89_v40 = vadd.f32 %v88_v33, %v85_v32  ;;  %v99_v41 = vstv %s398_s17  ;;  %v102_v42 = vstv %s400_s18  ;;  %v106_v43 = vstv %s404_s19  ;;  %s456_s4 = sld [smem:[#allocation2 + $0x23]]  ;;  %s460_s5 = sld [smem:[#allocation2 + $0x1c]] }
  0x2f   :  { %v67_v44 = vmax.f32 %v66_v37, 0.0  ;;  %v81_v45 = vadd.f32 %v80_v25, %v78_v38  ;;  %v100_v46 = vmul.f32 %v99_v41, %v370_v0  ;;  %v103_v47 = vmul.f32 %v102_v42, %v374_v1  ;;  %s462_s6 = sld [smem:[#allocation2 + $0x1f]]  ;;  %s466_s7 = sld [smem:[#allocation2 + $0x22]] }
  0x30   :  { %v93_v48 = vadd.f32 %v92_v39, %v89_v40  ;;  %v107_v49 = vmul.f32 %v106_v43, %v380_v2  ;;  %v114_v50 = vstv %s410_s20  ;;  %v117_v54 = vstv %s414_s21  ;;  %s470_s8 = sld [smem:[#allocation2 + $0x24]]  ;;  %s475_s9 = sld [smem:[#allocation2 + $0x26]] }
  0x31   :  { %v82_v51 = vmax.f32 %v81_v45, 0.0  ;;  %v104_v52 = vadd.f32 %v103_v47, %v100_v46  ;;  %v115_v53 = vmul.f32 %v114_v50, %v52_v36  ;;  %v110_v56 = vstv %s420_s22  ;;  %s479_s1 = sld [smem:[#allocation2 + $0x27]]  ;;  %s254_s10 = sld [smem:[#allocation2 + $0x25]] }
  0x32   :  { %v96_v55 = vadd.f32 %v95_v35, %v93_v48  ;;  %v118_v57 = vmul.f32 %v117_v54, %v67_v44  ;;  %v121_v58 = vstv %s422_s23  ;;  %v125_v61 = vstv %s425_s24  ;;  %s257_s11 = sld [smem:[#allocation2 + $0x28]]  ;;  %s258_s12 = sld [smem:[#allocation2 + $0x29]] }
  0x33   :  { %v108_v59 = vadd.f32 %v107_v49, %v104_v52  ;;  %v122_v60 = vmul.f32 %v121_v58, %v82_v51  ;;  %v129_v62 = vstv %s427_s25  ;;  %v137_v1 = vstv %s433_s26  ;;  %s328_s13 = smov [#allocation7]  }
  0x34   :  { %v97_v63 = vmax.f32 %v96_v55, 0.0  ;;  %v119_v0 = vadd.f32 %v118_v57, %v115_v53  ;;  %v140_v2 = vstv %s435_s27  ;;  %v138_v4 = vmul.f32 %v137_v1, %v52_v36  ;;  %s208_s14 = sshll.u32 %s328_s13, 4  ;;  %s209_s14 = int_to_ptr.vmem [resolvable:$true] %s208_s14 }
  0x35   :  { %v111_v3 = vadd.f32 %v110_v56, %v108_v59  ;;  %v141_v5 = vmul.f32 %v140_v2, %v67_v44  ;;  %v144_v6 = vstv %s438_s28  ;;  %v148_v10 = vstv %s443_s0  ;;  %s298_s15 = scalar_lea.vmem %s209_s14, 16  ;;  %s302_s16 = scalar_lea.vmem %s209_s14, 32 }
  0x36   :  { %v123_v7 = vadd.f32 %v122_v60, %v119_v0  ;;  %v126_v8 = vmul.f32 %v125_v61, %v97_v63  ;;  %v145_v9 = vmul.f32 %v144_v6, %v82_v51  ;;  %v149_v13 = vmul.f32 %v148_v10, %v97_v63  ;;  %p299_p11 = scmp.ne.s32.totalorder %s209_s14, %s298_s15  ;;  %p303_p12 = scmp.lt.s32.totalorder %s209_s14, %s209_s14 }
  0x37   :  { %v112_v11 = vmax.f32 %v111_v3, 0.0  ;;  %v142_v12 = vadd.f32 %v141_v5, %v138_v4  ;;  %v152_v14 = vstv %s447_s29  ;;  %v160_v16 = vstv %s451_s30  ;;  %p304_p13 = scmp.lt.s32.totalorder %s302_s16, %s298_s15 }
  0x38   :  { %v127_v15 = vadd.f32 %v126_v8, %v123_v7  ;;  %v163_v17 = vstv %s453_s3  ;;  %v161_v21 = vmul.f32 %v160_v16, %v52_v36  ;;  %v133_v22 = vstv %s456_s4 }
  0x39   :  { %v130_v18 = vmul.f32 %v129_v62, %v112_v11  ;;  %v146_v19 = vadd.f32 %v145_v9, %v142_v12  ;;  %v153_v20 = vmul.f32 %v152_v14, %v112_v11  ;;  %v164_v23 = vmul.f32 %v163_v17, %v67_v44  ;;  %p305_p0 = por %p304_p13, %p303_p12 }
  0x3a   :  { %v167_v24 = vstv %s460_s5  ;;  %v171_v25 = vstv %s462_s6  ;;  %v175_v29 = vstv %s466_s7  ;;  %v156_v30 = vstv %s470_s8 }
  0x3b   :  { %v131_v26 = vadd.f32 %v130_v18, %v127_v15  ;;  %v150_v27 = vadd.f32 %v149_v13, %v146_v19  ;;  %v168_v28 = vmul.f32 %v167_v24, %v82_v51  ;;  %v165_v31 = vadd.f32 %v164_v23, %v161_v21  ;;  %p306_p1 = pnand %p305_p0, %p299_p11 }
  0x3c   :  { %v172_v32 = vmul.f32 %v171_v25, %v97_v63  ;;  %v176_v37 = vmul.f32 %v175_v29, %v112_v11  ;;  %v183_v39 = vstv %s475_s9  ;;  %v186_v41 = vstv %s479_s1 }
  0x3d   :  { %v134_v33 = vadd.f32 %v133_v22, %v131_v26  ;;  %v154_v34 = vadd.f32 %v153_v20, %v150_v27  ;;  %v169_v35 = vadd.f32 %v168_v28, %v165_v31  ;;  %v179_v43 = vstv %s254_s10 }
  0x3e   :  { %v190_v48 = vstv %s257_s11  ;;  %v194_v52 = vstv %s258_s12 }
  0x3f   :  { %v135_v36 = vmax.f32 %v134_v33, 0.0  ;;  %v157_v38 = vadd.f32 %v156_v30, %v154_v34  ;;  %v173_v40 = vadd.f32 %v172_v32, %v169_v35 }
  0x41   :  { %v158_v42 = vmax.f32 %v157_v38, 0.0  ;;  %v177_v44 = vadd.f32 %v176_v37, %v173_v40  ;;  %v184_v45 = vmul.f32 %v183_v39, %v135_v36 }
  0x43   :  { %v187_v46 = vmul.f32 %v186_v41, %v158_v42  ;;  %v180_v47 = vadd.f32 %v179_v43, %v177_v44 }
  0x45   :  { %v181_v49 = vmax.f32 %v180_v47, 0.0  ;;  %v188_v50 = vadd.f32 %v187_v46, %v184_v45 }
  0x47   :  { %v191_v51 = vmul.f32 %v190_v48, %v181_v49 }
  0x49   :  { %v192_v53 = vadd.f32 %v191_v51, %v188_v50 }
  0x4b   :  { %v195_v54 = vadd.f32 %v194_v52, %v192_v53 }
  0x4d   :  { %v196_v55 = vsub.f32 0.0, %v195_v54 }
  0x4f   :  { %v197_v56 = vmul.f32 1.442695, %v196_v55 }
  0x51   :  { %262 = vpow2.f32 %v197_v56 }
  0x5b   :  { %v263_v57 = vpop.eup %262 }
  0x5c   :  { %v199_v58 = vadd.f32 1.0, %v263_v57 }
  0x5e   :  { %264 = vrcp.f32 %v199_v58 }
  0x68   :  { %v265_v59 = vpop.eup %264 }
  0x69   :  { %201 = vst [vmem:[#allocation7] sm:$0x1] %v265_v59 }
  0x6a   :  { %309 = shalt.err (!%p306_p1)
}
  0x6b   :  { %s310_s19 = scalar_lea.hbm %s502_s2, 16 }
  0x6c   :  { %p311_p2 = scmp.ne.s32.totalorder %s502_s2, %s310_s19  ;;  %p314_p3 = scmp.lt.u32.totalorder %s310_s19, %s502_s2 }
  0x6e   :  { %p316_p4 = pnand %p314_p3, %p311_p2 }
  0x70   :  { %319 = shalt.err (!%p316_p4)
}
  0x71   :  { %211 = dma.vmem_to_hbm [thread:$0]  %s209_s14, 16, %s502_s2, [#allocation4]  }
  0x72   :  { %324 = dma.done.wait [#allocation4], 16  }
  0x73   :  { %325 = vsyncadd [#allocation4], 4294967280 }
  0x74   :  { %215 = vsyncpa [#allocation3], 1 }
  0x75   :  { %216 = vsyncpa [#allocation4], 1 }
  0x76   :  { %217 = vsyncpa [#allocation5], 1 }

</bundles_post_ra>
